<compile_context>
chip_gen: v6e
topology: v6e:2x2x1
jax: 0.10.0
libtpu: 0.0.40
codegen_flags: <defaults>
</compile_context>

<pallas_src>
import functools

import jax
import jax.numpy as jnp
from jax.experimental import pallas as pl
from jax.experimental.pallas import tpu as pltpu


# ---------------------------------------------------------------------------
# helpers
# ---------------------------------------------------------------------------
def _row_tile(m, cap=1024):
    """Largest row tile <= cap that divides m (multiple of 8), else full m."""
    if m <= cap:
        return m
    for t in range(cap - cap % 8, 7, -8):
        if m % t == 0:
            return t
    return m


def _tensorcores_per_chip():
    """2 on v7x-class chips (2 TCs), else 1 (v5e / v6e)."""
    try:
        kind = jax.devices()[0].device_kind.lower()
    except Exception:
        return 1
    return 2 if ("v7" in kind or "tpu7" in kind or "7x" in kind) else 1


# ---------------------------------------------------------------------------
# Elementwise kernel: Sigmoid_up + Sigmoid_down in one lane-dense pass
# ---------------------------------------------------------------------------
def _sigmoid_ud_kernel(x_ref, up_ref, dn_ref):
    s = jax.nn.sigmoid(x_ref[...].astype(jnp.float32))
    up_ref[...] = ((s + 1.0) * 0.5).astype(up_ref.dtype)   # Sigmoid_up
    dn_ref[...] = (s * 0.5).astype(dn_ref.dtype)           # Sigmoid_down


def sigmoid_up_down(x):
    """Returns (Sigmoid_up(x), Sigmoid_down(x)) from a single pallas_call."""
    shp = x.shape
    if x.size % (8 * 128) == 0:
        x2 = x.reshape(-1, 128)          # lane-dense slab (full 128-lane stores)
    else:
        x2 = x.reshape(-1, shp[-1])
    m, n = x2.shape
    tm = _row_tile(m, cap=1024)
    up, dn = pl.pallas_call(
        _sigmoid_ud_kernel,
        out_shape=(jax.ShapeDtypeStruct((m, n), x.dtype),
                   jax.ShapeDtypeStruct((m, n), x.dtype)),
        grid=(m // tm,),
        in_specs=[pl.BlockSpec((tm, n), lambda i: (i, 0))],
        out_specs=(pl.BlockSpec((tm, n), lambda i: (i, 0)),
                   pl.BlockSpec((tm, n), lambda i: (i, 0))),
        compiler_params=pltpu.CompilerParams(dimension_semantics=("parallel",)),
    )(x2)
    return up.reshape(shp), dn.reshape(shp)


# ---------------------------------------------------------------------------
# Small standalone linear (g_function stand-in): bf16 weights, f32 accumulate
# ---------------------------------------------------------------------------
def _linear_kernel(x_ref, w_ref, b_ref, o_ref):
    y = jnp.dot(x_ref[...].astype(jnp.bfloat16), w_ref[...],
                preferred_element_type=jnp.float32)
    o_ref[...] = (y + b_ref[...]).astype(o_ref.dtype)


def pallas_linear(x, w_bf16, b):
    """y = x @ w + b; x: (M, K) f32, w: (K, N) bf16, b: (N,) f32."""
    m, k = x.shape
    n = w_bf16.shape[1]
    tm = _row_tile(m, cap=512)
    return pl.pallas_call(
        _linear_kernel,
        out_shape=jax.ShapeDtypeStruct((m, n), jnp.float32),
        grid=(m // tm,),
        in_specs=[pl.BlockSpec((tm, k), lambda i: (i, 0)),
                  pl.BlockSpec((k, n), lambda i: (0, 0)),
                  pl.BlockSpec((1, n), lambda i: (0, 0))],
        out_specs=pl.BlockSpec((tm, n), lambda i: (i, 0)),
        compiler_params=pltpu.CompilerParams(dimension_semantics=("parallel",)),
    )(x, w_bf16, b.reshape(1, n))


# ---------------------------------------------------------------------------
# Fused Cross_Transformer (+ tajador linear) kernel.
# Grid = (batch-split G, depth).  q1 / kv2 live in VMEM scratch across layers.
# ---------------------------------------------------------------------------
def _fused_ct_kernel(q_ref, kv_ref, pos_ref, vec_ref,
                     wqkv_ref, wao_ref, wff1a_ref, wff1b_ref,
                     wq_ref, wkv_ref, wco_ref, wffa_ref, wffb_ref,
                     wtaj_ref, btaj_ref,
                     qo_ref, to_ref,
                     kv_s, q_s,
                     *, heads, dim_head):
    layer = pl.program_id(1)
    n_layers = pl.num_programs(1)
    TB, D = q_ref.shape
    Lk = kv_ref.shape[1]
    inner = heads * dim_head
    dh = dim_head
    scale = dh ** -0.5

    # --- layer 0: load inputs, add pos_embedding, stash carries in VMEM ---
    @pl.when(layer == 0)
    def _init():
        kv0 = kv_ref[...].astype(jnp.float32) + pos_ref[...][None, :, :]
        kv_s[...] = kv0.reshape(TB * Lk, D)        # free view at D=128
        q_s[...] = q_ref[...].astype(jnp.float32)

    def ln(x, g, b):                               # layernorm, f32 math
        mu = jnp.mean(x, axis=-1, keepdims=True)
        xc = x - mu
        var = jnp.mean(xc * xc, axis=-1, keepdims=True)
        return xc * jax.lax.rsqrt(var + 1e-5) * g + b

    def mxu(x, w):                                 # MXU: bf16 in, f32 acc
        return jnp.dot(x.astype(jnp.bfloat16), w,
                       preferred_element_type=jnp.float32)

    def mha(q3, k3, v3):
        # q3: (R, Lq, inner); k3/v3: (R, Lkv, inner) f32 -> (R, Lq, inner).
        # Batched contractions over all sequences at once (single batch dim),
        # tiny static head loop (heads=4).  Softmax denom is an exact divide.
        outs = []
        for h in range(heads):
            sl = slice(h * dh, (h + 1) * dh)
            qh = q3[..., sl].astype(jnp.bfloat16)
            kh = k3[..., sl].astype(jnp.bfloat16)
            vh = v3[..., sl].astype(jnp.bfloat16)
            s = jnp.einsum("rqd,rkd->rqk", qh, kh,
                           preferred_element_type=jnp.float32) * scale
            s = s - jnp.max(s, axis=-1, keepdims=True)
            p = jnp.exp(s)
            p = p / jnp.sum(p, axis=-1, keepdims=True)
            outs.append(jnp.einsum("rqk,rkd->rqd", p.astype(jnp.bfloat16), vh,
                                   preferred_element_type=jnp.float32))
        return jnp.concatenate(outs, axis=-1)

    Vl = vec_ref[0]                                # (16, D) per-layer vectors
    kv2 = kv_s[...]
    q1 = q_s[...]

    # --- PreNorm(Attention) on kv + residual ---
    h = ln(kv2, Vl[0:1], Vl[1:2])
    qkv = mxu(h, wqkv_ref[0])                      # (TB*Lk, 3*inner)
    q3 = qkv[:, 0 * inner:1 * inner].reshape(TB, Lk, inner)   # 128-lane views
    k3 = qkv[:, 1 * inner:2 * inner].reshape(TB, Lk, inner)
    v3 = qkv[:, 2 * inner:3 * inner].reshape(TB, Lk, inner)
    o = mha(q3, k3, v3).reshape(TB * Lk, inner)
    kv2 = kv2 + mxu(o, wao_ref[0]) + Vl[2:3]

    # --- PreNorm(FeedForward) "ff_1" on kv + residual ---
    h = ln(kv2, Vl[3:4], Vl[4:5])
    h = jax.nn.gelu(mxu(h, wff1a_ref[0]) + Vl[5:6])
    kv2 = kv2 + mxu(h, wff1b_ref[0]) + Vl[6:7]
    kv_s[...] = kv2

    # --- Cross_Attention(q1, kv) + residual ---
    # TODO(synk): Cross_Attention class body is not in the source; standard
    # LN(q)/LN(kv) -> to_q / to_kv -> SDPA -> to_out is assumed.
    hq = ln(q1, Vl[7:8], Vl[8:9])
    hk = ln(kv2, Vl[9:10], Vl[10:11])
    qh = mxu(hq, wq_ref[0])                        # (TB, inner)
    kvh = mxu(hk, wkv_ref[0])                      # (TB*Lk, 2*inner)
    k3 = kvh[:, :inner].reshape(TB, Lk, inner)
    v3 = kvh[:, inner:].reshape(TB, Lk, inner)
    o = mha(qh[:, None, :], k3, v3).reshape(TB, inner)
    q1 = q1 + mxu(o, wco_ref[0]) + Vl[11:12]

    # --- PreNorm(FeedForward) "ff" on q1 + residual ---
    h = ln(q1, Vl[12:13], Vl[13:14])
    h = jax.nn.gelu(mxu(h, wffa_ref[0]) + Vl[14:15])
    q1 = q1 + mxu(h, wffb_ref[0]) + Vl[15:16]
    q_s[...] = q1

    # --- final layer: emit transformer output and fused tajador linear ---
    @pl.when(layer == n_layers - 1)
    def _finish():
        qo_ref[...] = q1.astype(qo_ref.dtype)
        taj = mxu(q1, wtaj_ref[...]) + btaj_ref[...]
        to_ref[...] = taj.astype(to_ref.dtype)


def fused_cross_transformer(q1, kv, params, taj_params, heads, dim_head):
    """q1: (B, D); kv: (B, Lk, D). Whole transformer (+tajador) in one call."""
    B, D = q1.shape
    Lk = kv.shape[1]
    depth = params["w_qkv"].shape[0]
    inner = heads * dim_head
    mlp = params["w_ff1a"].shape[2]

    # 2-way batch split only on chips with 2 TensorCores (v7x); otherwise keep
    # the full M per matmul on the single core.
    num_tc = _tensorcores_per_chip()
    G = 2 if (num_tc >= 2 and B % 2 == 0 and (B // 2) % 8 == 0) else 1
    TB = B // G

    def wl(shape):                              # per-layer stacked weight spec
        return pl.BlockSpec((1,) + shape, lambda g, l: (l, 0, 0))

    def const2(shape):                          # layer-invariant 2-D spec
        return pl.BlockSpec(shape, lambda g, l: (0, 0))

    kern = functools.partial(_fused_ct_kernel, heads=heads, dim_head=dim_head)
    q_out, taj_out = pl.pallas_call(
        kern,
        out_shape=(jax.ShapeDtypeStruct((B, D), jnp.float32),
                   jax.ShapeDtypeStruct((B, D), jnp.float32)),
        grid=(G, depth),
        in_specs=[
            pl.BlockSpec((TB, D), lambda g, l: (g, 0)),        # q1
            pl.BlockSpec((TB, Lk, D), lambda g, l: (g, 0, 0)), # kv
            const2((Lk, D)),                                   # pos_emb
            pl.BlockSpec((1, 16, D), lambda g, l: (l, 0, 0)),  # vecs
            wl((D, 3 * inner)),                                # w_qkv
            wl((inner, D)),                                    # w_ao
            wl((D, mlp)),                                      # w_ff1a
            wl((mlp, D)),                                      # w_ff1b
            wl((D, inner)),                                    # w_q
            wl((D, 2 * inner)),                                # w_kv
            wl((inner, D)),                                    # w_co
            wl((D, mlp)),                                      # w_ffa
            wl((mlp, D)),                                      # w_ffb
            const2((D, D)),                                    # w_taj
            const2((1, D)),                                    # b_taj
        ],
        out_specs=(pl.BlockSpec((TB, D), lambda g, l: (g, 0)),
                   pl.BlockSpec((TB, D), lambda g, l: (g, 0))),
        scratch_shapes=[pltpu.VMEM((TB * Lk, D), jnp.float32),  # kv2 carry
                        pltpu.VMEM((TB, D), jnp.float32)],      # q1 carry
        compiler_params=pltpu.CompilerParams(
            dimension_semantics=("parallel", "arbitrary"),
            vmem_limit_bytes=32 * 1024 * 1024),
    )(q1, kv, params["pos_emb"], params["vecs"], params["w_qkv"],
      params["w_ao"], params["w_ff1a"], params["w_ff1b"], params["w_q"],
      params["w_kv"], params["w_co"], params["w_ffa"], params["w_ffb"],
      taj_params["w"], taj_params["b"])
    return q_out, taj_out


# ---------------------------------------------------------------------------
# Data routing (pure gathers / reshapes — glue, plain JAX)
# ---------------------------------------------------------------------------
_RECAT_IDX = jnp.array(
    [0, 1, 2, 3, 4, 5, 6, 7, 8, 6, 7, 9, 6, 7, 10, 6, 7, 11, 6, 7, 12, 6, 7, 13,
     6, 7, 14, 6, 7, 15, 0, 3, 6, 1, 4, 7, 2, 5, 8, 2, 5, 9, 2, 5, 10, 2, 5, 11,
     2, 5, 12, 2, 5, 13, 2, 5, 14, 2, 5, 15], dtype=jnp.int32)

_RECOMBINE_IDX = jnp.array(
    [0, 1, 2, 10, 11, 12, 0, 1, 3, 10, 11, 13, 0, 1, 4, 10, 11, 14,
     0, 1, 5, 10, 11, 15, 0, 1, 6, 10, 11, 16, 0, 1, 7, 10, 11, 17,
     0, 1, 8, 10, 11, 18, 0, 1, 9, 10, 11, 19], dtype=jnp.int32)

_CHOISE_IDX = jnp.array(
    [[0, 1, 3, 4], [0, 1, 3, 5], [0, 1, 4, 5],
     [0, 2, 3, 4], [0, 2, 3, 5], [0, 2, 4, 5],
     [1, 2, 3, 4], [1, 2, 3, 5], [1, 2, 4, 5]], dtype=jnp.int32)


def recat(x):
    """Recat + Rearrange('b m n s d -> b s m (n d)'): (b,16,s,d) -> (b,s,20,3d)."""
    b, n, s, d = x.shape
    y = x[:, _RECAT_IDX].reshape(b, 20, 3, s, d)
    return jnp.transpose(y, (0, 3, 1, 2, 4)).reshape(b, s, 20, 3 * d)


def recombine(x):
    """Recombine: (b, s, 20, d) -> (b, s, 8, 6, d)."""
    b, s, m, d = x.shape
    return x[:, :, _RECOMBINE_IDX].reshape(b, s, 8, 6, d)


def get_choise(x):
    """get_choise: (b, s, n, 6, d) -> (b, s, n, 9, 4, d)."""
    return x[:, :, :, _CHOISE_IDX]


# ---------------------------------------------------------------------------
# Deterministic parameter init (stacked over depth, matmul weights in bf16)
# ---------------------------------------------------------------------------
def init_cross_transformer(key, dim, depth, heads, dim_head, mlp_dim, words):
    assert mlp_dim == dim, "vector packing assumes mlp_dim == dim (true here)"
    inner = heads * dim_head
    ks = jax.random.split(key, 10)

    def w(k, shape):
        return (jax.random.normal(k, shape, jnp.float32) * 0.02).astype(jnp.bfloat16)

    # vector params packed as (depth, 16, dim):
    # 0 attn_ln_g, 1 attn_ln_b, 2 attn_out_b, 3 ff1_ln_g, 4 ff1_ln_b, 5 ff1_b1,
    # 6 ff1_b2, 7 lnq_g, 8 lnq_b, 9 lnkv_g, 10 lnkv_b, 11 cross_out_b,
    # 12 ff_ln_g, 13 ff_ln_b, 14 ff_b1, 15 ff_b2
    vecs = jnp.zeros((depth, 16, dim), jnp.float32)
    for gi in (0, 3, 7, 9, 12):           # layernorm gains -> 1
        vecs = vecs.at[:, gi, :].set(1.0)

    return {
        "pos_emb": jax.random.normal(ks[0], (words, dim), jnp.float32),
        "vecs": vecs,
        "w_qkv": w(ks[1], (depth, dim, 3 * inner)),
        "w_ao": w(ks[2], (depth, inner, dim)),
        "w_ff1a": w(ks[3], (depth, dim, mlp_dim)),
        "w_ff1b": w(ks[4], (depth, mlp_dim, dim)),
        "w_q": w(ks[5], (depth, dim, inner)),
        "w_kv": w(ks[6], (depth, dim, 2 * inner)),
        "w_co": w(ks[7], (depth, inner, dim)),
        "w_ffa": w(ks[8], (depth, dim, mlp_dim)),
        "w_ffb": w(ks[9], (depth, mlp_dim, dim)),
    }


# ---------------------------------------------------------------------------
# Main: raven_clip forward (eval mode), real low_dim/depth, reduced patch grid
# ---------------------------------------------------------------------------
if __name__ == "__main__":
    key = jax.random.PRNGKey(0)
    b = 1
    n_panels = 16          # RAVEN panels (fixed by Recat)
    low_dim = 128          # module's real low_dim (keeps everything lane-dense)
    heads = 4
    dim_head = low_dim // heads
    mlp_dim = low_dim
    depth = 3              # module's real num_depth
    w_patches = 4          # reduced from (80/20)**2 = 16 to keep the demo small
    num_rule = 2

    k_lat, k_g, k_ct, k_taj = jax.random.split(key, 4)

    # TODO(synk): ViT / ViT_reverse / graph_mask_transformer / take_cls /
    # txt_mask_transformer / Bottleneck_judge / SinkhornDistance bodies are not
    # provided in the source; the pipeline starts from the ViT token latent and
    # uses linear stand-ins where marked.
    vit_latent = jax.random.normal(k_lat, (b, n_panels, w_patches, 2 * low_dim),
                                   jnp.float32)
    x_lat, bias = jnp.split(vit_latent, 2, axis=-1)   # x.chunk(2, dim=-1)

    # decoder_up / decoder_down final activations (ViT_reverse body: TODO above)
    recon_bias_up, recon_bias_down = sigmoid_up_down(x_lat + bias)

    # recat: (b, 16, s, d) -> (b, s, 20, 3d)
    feat = recat(x_lat)

    # TODO(synk): g_function = 3x Bottleneck_judge (class not provided); stand-in:
    # single Pallas linear 3d -> d (bf16 weights, f32 accumulate).
    g_w = (jax.random.normal(k_g, (3 * low_dim, low_dim), jnp.float32)
           * 0.02).astype(jnp.bfloat16)
    g_b = jnp.zeros((low_dim,), jnp.float32)
    x20 = pallas_linear(feat.reshape(-1, 3 * low_dim), g_w, g_b)
    x20 = x20.reshape(b, w_patches, 20, low_dim)

    comb = recombine(x20)                      # (b, s, 8, 6, d)
    choices = get_choise(comb)                 # (b, s, 8, 9, 4, d)
    # TODO(synk): graph_mask_transformer + take_cls(num_rule): first num_rule
    # tokens used as the rule cls tokens as a stand-in.
    qkv_stub = choices[:, :, :, :, :num_rule, :]    # (b, s, 8, 9, 2, d)

    ct_params = init_cross_transformer(k_ct, low_dim, depth, heads, dim_head,
                                       mlp_dim, words=8)
    taj_params = {
        "w": (jax.random.normal(k_taj, (low_dim, low_dim), jnp.float32)
              * 0.02).astype(jnp.bfloat16),
        "b": jnp.zeros((1, low_dim), jnp.float32),
    }

    # qkv.chunk(num_rule).mean(dim=1).squeeze()  (plain JAX on tiny tensors)
    rule_means = [jnp.squeeze(jnp.mean(qkv_stub[..., r, :], axis=1))
                  for r in range(num_rule)]

    # Fold both rules + (b, s, panel) rows into one batch for the fused
    # transformer (identical weights per rule, rows are independent).
    t_all = jnp.moveaxis(qkv_stub, 4, 0)            # (rule, b, s, 8, 9, d)
    q_all = t_all[..., 0, :].reshape(-1, low_dim)          # split([1,8], dim=3)
    kv_all = t_all[..., 1:, :].reshape(-1, 8, low_dim)
    # shuffle_sample_ is identity in eval mode

    q_out, taj_lin = fused_cross_transformer(q_all, kv_all, ct_params,
                                             taj_params, heads, dim_head)

    # tajador tail: '(r b s n) d -> r b n (s d)' mean(-1), then sum over rules
    taj_lin = taj_lin.reshape(num_rule, b, w_patches, 8, low_dim)
    out_sum = jnp.sum(jnp.mean(taj_lin, axis=(2, 4)), axis=0)      # (b, 8)

    results = (rule_means[0], rule_means[1],
               x20.reshape(-1, low_dim),       # x.reshape(-1, low_dim)
               out_sum,
               bias.reshape(-1, w_patches, low_dim),
               recon_bias_up, recon_bias_down,
               q_out)
    for r in results:
        jax.block_until_ready(r)
    print("KERNEL_OK")
</pallas_src>

<mosaic_0001>
module attributes {stable_mosaic.version = 11 : i64} {
  func.func @_sigmoid_ud_kernel(%arg0: i32, %arg1: memref<64x128xf32, #tpu.memory_space<vmem>>, %arg2: memref<64x128xf32, #tpu.memory_space<vmem>>, %arg3: memref<64x128xf32, #tpu.memory_space<vmem>>) attributes {dimension_semantics = [#tpu.dimension_semantics<parallel>], iteration_bounds = array<i64: 1>, scalar_prefetch = 0 : i64, scratch_operands = 0 : i64, tpu.core_type = #tpu.core_type<tc>, window_params = [{transform_indices = @transform_0, window_bounds = array<i64: 64, 128>}, {transform_indices = @transform_1, window_bounds = array<i64: 64, 128>}, {transform_indices = @transform_2, window_bounds = array<i64: 64, 128>}]} {
    %c0 = arith.constant 0 : index
    %c0_0 = arith.constant 0 : index
    %0 = vector.load %arg1[%c0, %c0_0] : memref<64x128xf32, #tpu.memory_space<vmem>>, vector<64x128xf32>
    %1 = arith.negf %0 : vector<64x128xf32>
    %2 = math.exp %1 : vector<64x128xf32>
    %cst = arith.constant 1.000000e+00 : f32
    %3 = vector.broadcast %cst : f32 to vector<64x128xf32>
    %4 = arith.addf %3, %2 : vector<64x128xf32>
    %5 = arith.divf %3, %4 : vector<64x128xf32>
    %cst_1 = arith.constant 1.000000e+00 : f32
    %6 = vector.broadcast %cst_1 : f32 to vector<64x128xf32>
    %7 = arith.addf %5, %6 : vector<64x128xf32>
    %cst_2 = arith.constant 5.000000e-01 : f32
    %8 = vector.broadcast %cst_2 : f32 to vector<64x128xf32>
    %9 = arith.mulf %7, %8 : vector<64x128xf32>
    %c0_3 = arith.constant 0 : index
    %c0_4 = arith.constant 0 : index
    %10 = vector.load %arg2[%c0_3, %c0_4] : memref<64x128xf32, #tpu.memory_space<vmem>>, vector<64x128xf32>
    tpu.vector_store %arg2[%c0_3, %c0_4], %9 {strides = array<i32>} : memref<64x128xf32, #tpu.memory_space<vmem>>, vector<64x128xf32>,
    %cst_5 = arith.constant 5.000000e-01 : f32
    %11 = vector.broadcast %cst_5 : f32 to vector<64x128xf32>
    %12 = arith.mulf %5, %11 : vector<64x128xf32>
    %c0_6 = arith.constant 0 : index
    %c0_7 = arith.constant 0 : index
    %13 = vector.load %arg3[%c0_6, %c0_7] : memref<64x128xf32, #tpu.memory_space<vmem>>, vector<64x128xf32>
    tpu.vector_store %arg3[%c0_6, %c0_7], %12 {strides = array<i32>} : memref<64x128xf32, #tpu.memory_space<vmem>>, vector<64x128xf32>,
    return
  }
  func.func @transform_0(%arg0: i32) -> (i32, i32) {
    %c0_i32 = arith.constant 0 : i32
    %c0_i32_0 = arith.constant 0 : i32
    return %arg0, %c0_i32 : i32, i32
  }
  func.func @transform_1(%arg0: i32) -> (i32, i32) {
    %c0_i32 = arith.constant 0 : i32
    %c0_i32_0 = arith.constant 0 : i32
    return %arg0, %c0_i32 : i32, i32
  }
  func.func @transform_2(%arg0: i32) -> (i32, i32) {
    %c0_i32 = arith.constant 0 : i32
    %c0_i32_0 = arith.constant 0 : i32
    return %arg0, %c0_i32 : i32, i32
  }
}

</mosaic_0001>

<bundles_post_ra>
// kernel: tpu_custom_call.1
= control target key start
LH: loop header
LB: loop body
LE: loop exit
PB: predicated region body
PF: predicated region fallthrough
CT: control target
= control target key end

     0   :  { %8 = vsyncpa [#allocation3], 0  ;;  %s304_s0 = inlined_call_operand.hbm [shape: f32[64,128], index: 0, kind: input, shape index: {}]   ;;  %s305_s1 = inlined_call_operand.hbm [shape: f32[64,128], index: 1, kind: output, shape index: {0}]   ;;  %s306_s2 = inlined_call_operand.hbm [shape: f32[64,128], index: 2, kind: output, shape index: {1}]  }
   0x1   :  { %9 = vsyncpa [#allocation4], 0 }
   0x2   :  { %10 = vsyncpa [#allocation7], 0  ;;  %s266_s9 = smov [#allocation2]  }
   0x3   :  { %s16_s10 = sshll.u32 %s266_s9, 4  ;;  %s17_s10 = int_to_ptr.vmem [resolvable:$true] %s16_s10 }
   0x4   :  { %s208_s11 = scalar_lea.vmem %s17_s10, 1024  ;;  %p213_p1 = scmp.lt.s32.totalorder %s17_s10, %s17_s10 }
   0x5   :  { %p209_p0 = scmp.ne.s32.totalorder %s17_s10, %s208_s11  ;;  %p214_p2 = scmp.lt.s32.totalorder %s208_s11, %s208_s11 }
   0x7   :  { %p215_p3 = por %p214_p2, %p213_p1 }
   0x9   :  { %p216_p4 = pnand %p215_p3, %p209_p0 }
   0xb   :  { %219 = shalt.err (!%p216_p4)
}
   0xc   :  { %s267_s12 = smov 128   ;;  %s268_s13 = smov 8  }
   0xd   :  { %22 = dma.hbm_to_vmem [thread:$0]  %s304_s0, 1024, %s17_s10, [#allocation3], %s267_s12, %s267_s12, %s268_s13  }
   0xe   :  { %260 = dma.done.wait [#allocation3], 1024  }
   0xf   :  { %261 = vsyncadd [#allocation3], 4294966272  ;;  %v26_v0 = vld [vmem:[#allocation2] sm:$0xff]  ;;  %v27_v1 = vld [vmem:[#allocation2 + $0x8] sm:$0xff]  ;;  %s269_s0 = smov [#allocation6]   ;;  %s270_s17 = smov [#allocation5]  }
  0x10   :  { %v28_v2 = vld [vmem:[#allocation2 + $0x10] sm:$0xff]  ;;  %v155_v3 = vmul.f32 -1.442695, %v26_v0  ;;  %v156_v4 = vmul.f32 -1.442695, %v27_v1  ;;  %v29_v6 = vld [vmem:[#allocation2 + $0x18] sm:$0xff] }
  0x11   :  { %v157_v5 = vmul.f32 -1.442695, %v28_v2  ;;  %v30_v7 = vld [vmem:[#allocation2 + $0x20] sm:$0xff]  ;;  %v31_v8 = vld [vmem:[#allocation2 + $0x28] sm:$0xff]  ;;  %v158_v9 = vmul.f32 -1.442695, %v29_v6 }
  0x12   :  { %168 = vpow2.f32 %v155_v3  ;;  %v159_v10 = vmul.f32 -1.442695, %v30_v7  ;;  %v160_v11 = vmul.f32 -1.442695, %v31_v8  ;;  %v32_v12 = vld [vmem:[#allocation2 + $0x30] sm:$0xff]  ;;  %v33_v13 = vld [vmem:[#allocation2 + $0x38] sm:$0xff] }
  0x13   :  { %170 = vpow2.f32 %v156_v4  ;;  %v161_v14 = vmul.f32 -1.442695, %v32_v12  ;;  %v162_v15 = vmul.f32 -1.442695, %v33_v13  ;;  %s139_s16 = sshll.u32 %s269_s0, 4  ;;  %s127_s18 = sshll.u32 %s270_s17, 4  ;;  %s140_s16 = int_to_ptr.vmem [resolvable:$true] %s139_s16  ;;  %s128_s18 = int_to_ptr.vmem [resolvable:$true] %s127_s18 }
  0x14   :  { %172 = vpow2.f32 %v157_v5  ;;  %s220_s19 = scalar_lea.vmem %s140_s16, 1024  ;;  %p225_p6 = scmp.lt.s32.totalorder %s140_s16, %s140_s16 }
  0x15   :  { %174 = vpow2.f32 %v158_v9  ;;  %p221_p5 = scmp.ne.s32.totalorder %s140_s16, %s220_s19  ;;  %p226_p7 = scmp.lt.s32.totalorder %s220_s19, %s220_s19 }
  0x16   :  { %176 = vpow2.f32 %v159_v10 }
  0x17   :  { %178 = vpow2.f32 %v160_v11  ;;  %p227_p8 = por %p226_p7, %p225_p6 }
  0x18   :  { %180 = vpow2.f32 %v161_v14 }
  0x19   :  { %182 = vpow2.f32 %v162_v15  ;;  %p228_p9 = pnand %p227_p8, %p221_p5 }
  0x1f   :  { %v169_v16 = vpop.eup %168 }
  0x20   :  { %v171_v17 = vpop.eup %170  ;;  %v58_v18 = vadd.f32 1.0, %v169_v16 }
  0x21   :  { %v173_v19 = vpop.eup %172  ;;  %v59_v20 = vadd.f32 1.0, %v171_v17 }
  0x22   :  { %v175_v21 = vpop.eup %174  ;;  %184 = vrcp.f32 %v58_v18  ;;  %v60_v22 = vadd.f32 1.0, %v173_v19 }
  0x23   :  { %v177_v23 = vpop.eup %176  ;;  %186 = vrcp.f32 %v59_v20  ;;  %v61_v24 = vadd.f32 1.0, %v175_v21 }
  0x24   :  { %v179_v25 = vpop.eup %178  ;;  %188 = vrcp.f32 %v60_v22  ;;  %v62_v26 = vadd.f32 1.0, %v177_v23 }
  0x25   :  { %v181_v27 = vpop.eup %180  ;;  %190 = vrcp.f32 %v61_v24  ;;  %v63_v28 = vadd.f32 1.0, %v179_v25 }
  0x26   :  { %v183_v29 = vpop.eup %182  ;;  %192 = vrcp.f32 %v62_v26  ;;  %v64_v30 = vadd.f32 1.0, %v181_v27 }
  0x27   :  { %194 = vrcp.f32 %v63_v28  ;;  %v65_v31 = vadd.f32 1.0, %v183_v29 }
  0x28   :  { %196 = vrcp.f32 %v64_v30 }
  0x29   :  { %198 = vrcp.f32 %v65_v31 }
  0x2f   :  { %v185_v32 = vpop.eup %184 }
  0x30   :  { %v187_v33 = vpop.eup %186  ;;  %v82_v34 = vadd.f32 1.0, %v185_v32  ;;  %v106_v35 = vmul.f32 0.5, %v185_v32 }
  0x31   :  { %v189_v36 = vpop.eup %188  ;;  %v83_v37 = vadd.f32 1.0, %v187_v33  ;;  %v107_v38 = vmul.f32 0.5, %v187_v33 }
  0x32   :  { %v191_v39 = vpop.eup %190  ;;  %v90_v40 = vmul.f32 0.5, %v82_v34  ;;  %v84_v41 = vadd.f32 1.0, %v189_v36  ;;  %114 = vst [vmem:[#allocation6] sm:$0xff] %v106_v35  ;;  %v108_v42 = vmul.f32 0.5, %v189_v36 }
  0x33   :  { %v193_v43 = vpop.eup %192  ;;  %v91_v44 = vmul.f32 0.5, %v83_v37  ;;  %v85_v45 = vadd.f32 1.0, %v191_v39  ;;  %115 = vst [vmem:[#allocation6 + $0x8] sm:$0xff] %v107_v38  ;;  %v109_v46 = vmul.f32 0.5, %v191_v39 }
  0x34   :  { %v195_v47 = vpop.eup %194  ;;  %98 = vst [vmem:[#allocation5] sm:$0xff] %v90_v40  ;;  %v92_v48 = vmul.f32 0.5, %v84_v41  ;;  %v86_v49 = vadd.f32 1.0, %v193_v43  ;;  %116 = vst [vmem:[#allocation6 + $0x10] sm:$0xff] %v108_v42  ;;  %v110_v50 = vmul.f32 0.5, %v193_v43 }
  0x35   :  { %v197_v51 = vpop.eup %196  ;;  %99 = vst [vmem:[#allocation5 + $0x8] sm:$0xff] %v91_v44  ;;  %v93_v52 = vmul.f32 0.5, %v85_v45  ;;  %v87_v53 = vadd.f32 1.0, %v195_v47  ;;  %117 = vst [vmem:[#allocation6 + $0x18] sm:$0xff] %v109_v46  ;;  %v111_v54 = vmul.f32 0.5, %v195_v47 }
  0x36   :  { %v199_v55 = vpop.eup %198  ;;  %100 = vst [vmem:[#allocation5 + $0x10] sm:$0xff] %v92_v48  ;;  %v94_v56 = vmul.f32 0.5, %v86_v49  ;;  %v88_v57 = vadd.f32 1.0, %v197_v51  ;;  %118 = vst [vmem:[#allocation6 + $0x20] sm:$0xff] %v110_v50  ;;  %v112_v58 = vmul.f32 0.5, %v197_v51 }
  0x37   :  { %101 = vst [vmem:[#allocation5 + $0x18] sm:$0xff] %v93_v52  ;;  %v95_v59 = vmul.f32 0.5, %v87_v53  ;;  %v89_v60 = vadd.f32 1.0, %v199_v55  ;;  %119 = vst [vmem:[#allocation6 + $0x28] sm:$0xff] %v111_v54  ;;  %v113_v61 = vmul.f32 0.5, %v199_v55 }
  0x38   :  { %102 = vst [vmem:[#allocation5 + $0x20] sm:$0xff] %v94_v56  ;;  %v96_v62 = vmul.f32 0.5, %v88_v57  ;;  %120 = vst [vmem:[#allocation6 + $0x30] sm:$0xff] %v112_v58 }
  0x39   :  { %103 = vst [vmem:[#allocation5 + $0x28] sm:$0xff] %v95_v59  ;;  %v97_v63 = vmul.f32 0.5, %v89_v60  ;;  %121 = vst [vmem:[#allocation6 + $0x38] sm:$0xff] %v113_v61 }
  0x3a   :  { %104 = vst [vmem:[#allocation5 + $0x30] sm:$0xff] %v96_v62 }
  0x3b   :  { %231 = shalt.err (!%p228_p9)
}
  0x3c   :  { %145 = dma.vmem_to_hbm [thread:$0]  %s140_s16, 1024, %s306_s2, [#allocation7], %s267_s12, %s267_s12, %s268_s13   ;;  %105 = vst [vmem:[#allocation5 + $0x38] sm:$0xff] %v97_v63 }
  0x3d   :  { %s240_s22 = scalar_lea.vmem %s128_s18, 1024  ;;  %p245_p11 = scmp.lt.s32.totalorder %s128_s18, %s128_s18 }
  0x3e   :  { %p241_p10 = scmp.ne.s32.totalorder %s128_s18, %s240_s22  ;;  %p246_p12 = scmp.lt.s32.totalorder %s240_s22, %s240_s22 }
  0x40   :  { %p247_p13 = por %p246_p12, %p245_p11 }
  0x42   :  { %p248_p0 = pnand %p247_p13, %p241_p10 }
  0x44   :  { %251 = shalt.err (!%p248_p0)
}
  0x45   :  { %133 = dma.vmem_to_hbm [thread:$0]  %s128_s18, 1024, %s305_s1, [#allocation4], %s267_s12, %s267_s12, %s268_s13  }
  0x46   :  { %262 = dma.done.wait [#allocation4], 1024  }
  0x47   :  { %263 = vsyncadd [#allocation4], 4294966272 }
  0x48   :  { %264 = dma.done.wait [#allocation7], 1024  }
  0x49   :  { %265 = vsyncadd [#allocation7], 4294966272 }
  0x4a   :  { %152 = vsyncpa [#allocation3], 1 }
  0x4b   :  { %153 = vsyncpa [#allocation4], 1 }
  0x4c   :  { %154 = vsyncpa [#allocation7], 1 }

</bundles_post_ra>
